<compile_context>
chip_gen: v6e
topology: v6e:2x2x1
jax: 0.10.0
libtpu: 0.0.40
codegen_flags: <defaults>
</compile_context>

<pallas_src>
import jax
import jax.numpy as jnp
import numpy as np
from jax.experimental import pallas as pl
from jax.experimental.pallas import tpu as pltpu


def _round_up(x, m):
    return ((x + m - 1) // m) * m


# --------------------------------------------------------------------------
# Kernels
# --------------------------------------------------------------------------
def _fusion_hard_kernel(feat_ref, w0_ref, w1_ref, b0_ref, b1_ref,
                        g0_ref, g1_ref, out_ref):
    """out = feat * onehot(argmax_{c}(feat@W_c + b_c + g_c))[..., 0]

    Only the sign of the class-0 minus class-1 logit matters, so everything
    collapses into one matmul + one compare (no softmax, no exp, no temp).
    """
    feat = feat_ref[...]
    w_diff = w0_ref[...] - w1_ref[...]                       # (f_len, f_len), tiny VPU op
    d = jnp.dot(feat, w_diff, preferred_element_type=jnp.float32)
    d = d + (b0_ref[...] - b1_ref[...]) + (g0_ref[...] - g1_ref[...])
    # d >= 0  ==  class 0 wins (first-max tie-break, matching torch argmax).
    out_ref[...] = jnp.where(d >= 0.0, feat, jnp.zeros_like(feat))


def _fusion_soft_kernel(feat_ref, w_ref, b_ref, out_ref):
    """out = feat * (feat @ W + b)  -- the 'soft' fuse method."""
    feat = feat_ref[...]
    weights = jnp.dot(feat, w_ref[...], preferred_element_type=jnp.float32) + b_ref[...]
    out_ref[...] = feat * weights


# --------------------------------------------------------------------------
# Wrappers
# --------------------------------------------------------------------------
def _row_tiling(n_rows):
    tb = 256
    if n_rows < tb:
        tb = _round_up(n_rows, 8)
    n_pad = _round_up(n_rows, tb)
    return tb, n_pad


def fusion_cat_forward(v, i):
    # torch.cat((v, i), -1): pure layout, no kernel needed.
    return jnp.concatenate([v, i], axis=-1)


def fusion_hard_forward(v, i, w_pt, b_pt, gumbel):
    """'hard' fuse method.

    v: (B, S, v_f_len), i: (B, S, i_f_len)
    w_pt: (2*f_len, f_len)  (nn.Linear weight layout),  b_pt: (2*f_len,)
    gumbel: (B, S, f_len, 2) standard Gumbel noise (sampled in the wrapper;
            torch samples it inside F.gumbel_softmax).
    """
    B, S, vfl = v.shape
    ifl = i.shape[-1]
    f_len = vfl + ifl
    n = B * S

    # torch.cat + flatten of (B, S) -> layout plumbing in the wrapper keeps the
    # kernel input/output lane-dense (f_len wide) and rectangular.
    feat = jnp.concatenate([v, i], axis=-1).reshape(n, f_len).astype(jnp.float32)

    # nn.Linear stores weight as (out, in); re-layout to (in, out) and split the
    # interleaved (f_len, 2) class columns once, outside the kernel.
    w_io = jnp.transpose(w_pt).astype(jnp.float32)           # (f_len, 2*f_len)
    w0 = w_io[:, 0::2]                                       # class-0 columns (f_len, f_len)
    w1 = w_io[:, 1::2]                                       # class-1 columns
    b0 = b_pt[0::2].reshape(1, f_len).astype(jnp.float32)
    b1 = b_pt[1::2].reshape(1, f_len).astype(jnp.float32)
    g0 = gumbel[..., 0].reshape(n, f_len).astype(jnp.float32)
    g1 = gumbel[..., 1].reshape(n, f_len).astype(jnp.float32)

    tb, n_pad = _row_tiling(n)
    if n_pad != n:
        pad = ((0, n_pad - n), (0, 0))
        feat = jnp.pad(feat, pad)
        g0 = jnp.pad(g0, pad)
        g1 = jnp.pad(g1, pad)

    row_spec = pl.BlockSpec((tb, f_len), lambda r: (r, 0))
    w_spec = pl.BlockSpec((f_len, f_len), lambda r: (0, 0))
    b_spec = pl.BlockSpec((1, f_len), lambda r: (0, 0))

    cost = pl.CostEstimate(
        flops=2 * n_pad * f_len * f_len + 6 * n_pad * f_len,
        transcendentals=0,
        bytes_accessed=4 * (4 * n_pad * f_len + 2 * f_len * f_len + 2 * f_len),
    )

    out = pl.pallas_call(
        _fusion_hard_kernel,
        out_shape=jax.ShapeDtypeStruct((n_pad, f_len), jnp.float32),
        grid=(n_pad // tb,),
        in_specs=[row_spec, w_spec, w_spec, b_spec, b_spec, row_spec, row_spec],
        out_specs=row_spec,
        compiler_params=pltpu.CompilerParams(dimension_semantics=("parallel",)),
        cost_estimate=cost,
    )(feat, w0, w1, b0, b1, g0, g1)

    return out[:n].reshape(B, S, f_len)


def fusion_soft_forward(v, i, w_pt, b_pt):
    """'soft' fuse method: feat_cat * Linear(f_len, f_len)(feat_cat)."""
    B, S, vfl = v.shape
    ifl = i.shape[-1]
    f_len = vfl + ifl
    n = B * S

    feat = jnp.concatenate([v, i], axis=-1).reshape(n, f_len).astype(jnp.float32)
    w_io = jnp.transpose(w_pt).astype(jnp.float32)           # (f_len, f_len)
    b = b_pt.reshape(1, f_len).astype(jnp.float32)

    tb, n_pad = _row_tiling(n)
    if n_pad != n:
        feat = jnp.pad(feat, ((0, n_pad - n), (0, 0)))

    row_spec = pl.BlockSpec((tb, f_len), lambda r: (r, 0))
    w_spec = pl.BlockSpec((f_len, f_len), lambda r: (0, 0))
    b_spec = pl.BlockSpec((1, f_len), lambda r: (0, 0))

    cost = pl.CostEstimate(
        flops=2 * n_pad * f_len * f_len + 2 * n_pad * f_len,
        transcendentals=0,
        bytes_accessed=4 * (2 * n_pad * f_len + f_len * f_len + f_len),
    )

    out = pl.pallas_call(
        _fusion_soft_kernel,
        out_shape=jax.ShapeDtypeStruct((n_pad, f_len), jnp.float32),
        grid=(n_pad // tb,),
        in_specs=[row_spec, w_spec, b_spec],
        out_specs=row_spec,
        compiler_params=pltpu.CompilerParams(dimension_semantics=("parallel",)),
        cost_estimate=cost,
    )(feat, w_io, b)

    return out[:n].reshape(B, S, f_len)


# --------------------------------------------------------------------------
# Pure-JAX references (mirror the PyTorch forward exactly)
# --------------------------------------------------------------------------
def reference_hard(v, i, w_pt, b_pt, gumbel, tau=1.0):
    feat = jnp.concatenate([v, i], axis=-1)
    f_len = feat.shape[-1]
    weights = feat @ w_pt.T + b_pt                            # (B, S, 2*f_len)
    weights = weights.reshape(v.shape[0], v.shape[1], f_len, 2)
    y = (weights + gumbel) / tau
    soft = jax.nn.softmax(y, axis=-1)
    hard = jax.nn.one_hot(jnp.argmax(soft, axis=-1), 2, dtype=feat.dtype)
    return feat * hard[..., 0]


def reference_soft(v, i, w_pt, b_pt):
    feat = jnp.concatenate([v, i], axis=-1)
    return feat * (feat @ w_pt.T + b_pt)


# --------------------------------------------------------------------------
if __name__ == "__main__":
    # Small shapes consistent with the module: opt.v_f_len=24, opt.i_f_len=8.
    v_f_len, i_f_len = 24, 8
    f_len = v_f_len + i_f_len                                 # 32
    B, S = 2, 8

    key = jax.random.PRNGKey(0)
    kv, ki, kw, kb, kw2, kb2, kg = jax.random.split(key, 7)
    v = jax.random.normal(kv, (B, S, v_f_len), jnp.float32)
    i = jax.random.normal(ki, (B, S, i_f_len), jnp.float32)

    # 'hard' params: nn.Linear(f_len, 2*f_len)   (weight stored (out, in))
    w_hard = jax.random.normal(kw, (2 * f_len, f_len), jnp.float32) / np.sqrt(f_len)
    b_hard = jax.random.normal(kb, (2 * f_len,), jnp.float32) * 0.01
    # 'soft' params: nn.Linear(f_len, f_len)
    w_soft = jax.random.normal(kw2, (f_len, f_len), jnp.float32) / np.sqrt(f_len)
    b_soft = jax.random.normal(kb2, (f_len,), jnp.float32) * 0.01

    # Gumbel noise (same distribution torch samples inside F.gumbel_softmax).
    u = jax.random.uniform(kg, (B, S, f_len, 2), jnp.float32, minval=1e-10, maxval=1.0)
    gumbel = -jnp.log(-jnp.log(u))

    out_hard = fusion_hard_forward(v, i, w_hard, b_hard, gumbel)
    out_soft = fusion_soft_forward(v, i, w_soft, b_soft)
    out_cat = fusion_cat_forward(v, i)
    jax.block_until_ready((out_hard, out_soft, out_cat))

    ref_h = reference_hard(v, i, w_hard, b_hard, gumbel)
    ref_s = reference_soft(v, i, w_soft, b_soft)
    ref_c = jnp.concatenate([v, i], axis=-1)

    np.testing.assert_allclose(np.asarray(out_hard), np.asarray(ref_h), rtol=1e-5, atol=1e-5)
    np.testing.assert_allclose(np.asarray(out_soft), np.asarray(ref_s), rtol=1e-3, atol=1e-3)
    np.testing.assert_allclose(np.asarray(out_cat), np.asarray(ref_c), rtol=0, atol=0)

    # TODO(synk): straight-through gradient of gumbel_softmax(hard=True) is not
    # implemented (forward-only kernel, no custom_vjp).
    print("KERNEL_OK")
</pallas_src>

<mosaic_0001>
module attributes {stable_mosaic.version = 11 : i64} {
  func.func @_fusion_hard_kernel(%arg0: i32, %arg1: memref<16x32xf32, #tpu.memory_space<vmem>>, %arg2: memref<32x32xf32, #tpu.memory_space<vmem>>, %arg3: memref<32x32xf32, #tpu.memory_space<vmem>>, %arg4: memref<1x32xf32, #tpu.memory_space<vmem>>, %arg5: memref<1x32xf32, #tpu.memory_space<vmem>>, %arg6: memref<16x32xf32, #tpu.memory_space<vmem>>, %arg7: memref<16x32xf32, #tpu.memory_space<vmem>>, %arg8: memref<16x32xf32, #tpu.memory_space<vmem>>) attributes {dimension_semantics = [#tpu.dimension_semantics<parallel>], iteration_bounds = array<i64: 1>, scalar_prefetch = 0 : i64, scratch_operands = 0 : i64, tpu.core_type = #tpu.core_type<tc>, window_params = [{transform_indices = @transform_0, window_bounds = array<i64: 16, 32>}, {pipeline_mode = #tpu.pipeline_mode<synchronous>, transform_indices = @transform_1, window_bounds = array<i64: 32, 32>}, {pipeline_mode = #tpu.pipeline_mode<synchronous>, transform_indices = @transform_2, window_bounds = array<i64: 32, 32>}, {pipeline_mode = #tpu.pipeline_mode<synchronous>, transform_indices = @transform_3, window_bounds = array<i64: 1, 32>}, {pipeline_mode = #tpu.pipeline_mode<synchronous>, transform_indices = @transform_4, window_bounds = array<i64: 1, 32>}, {transform_indices = @transform_5, window_bounds = array<i64: 16, 32>}, {transform_indices = @transform_6, window_bounds = array<i64: 16, 32>}, {transform_indices = @transform_7, window_bounds = array<i64: 16, 32>}]} {
    %c0 = arith.constant 0 : index
    %c0_0 = arith.constant 0 : index
    %0 = vector.load %arg1[%c0, %c0_0] : memref<16x32xf32, #tpu.memory_space<vmem>>, vector<16x32xf32>
    %c0_1 = arith.constant 0 : index
    %c0_2 = arith.constant 0 : index
    %1 = vector.load %arg2[%c0_1, %c0_2] : memref<32x32xf32, #tpu.memory_space<vmem>>, vector<32x32xf32>
    %c0_3 = arith.constant 0 : index
    %c0_4 = arith.constant 0 : index
    %2 = vector.load %arg3[%c0_3, %c0_4] : memref<32x32xf32, #tpu.memory_space<vmem>>, vector<32x32xf32>
    %3 = arith.subf %1, %2 : vector<32x32xf32>
    %cst = arith.constant dense<0.000000e+00> : vector<16x32xf32>
    %4 = tpu.matmul %0, %3, %cst {dimension_numbers = #tpu.dot_dimension_numbers<[1], [0], [0], [1], [0, 0, 1, 1], [], []>} : vector<16x32xf32>, vector<32x32xf32>, vector<16x32xf32> -> vector<16x32xf32>
    %c0_5 = arith.constant 0 : index
    %c0_6 = arith.constant 0 : index
    %5 = vector.load %arg4[%c0_5, %c0_6] : memref<1x32xf32, #tpu.memory_space<vmem>>, vector<1x32xf32>
    %c0_7 = arith.constant 0 : index
    %c0_8 = arith.constant 0 : index
    %6 = vector.load %arg5[%c0_7, %c0_8] : memref<1x32xf32, #tpu.memory_space<vmem>>, vector<1x32xf32>
    %7 = arith.subf %5, %6 : vector<1x32xf32>
    %8 = vector.broadcast %7 : vector<1x32xf32> to vector<16x32xf32>
    %9 = arith.addf %4, %8 : vector<16x32xf32>
    %c0_9 = arith.constant 0 : index
    %c0_10 = arith.constant 0 : index
    %10 = vector.load %arg6[%c0_9, %c0_10] : memref<16x32xf32, #tpu.memory_space<vmem>>, vector<16x32xf32>
    %c0_11 = arith.constant 0 : index
    %c0_12 = arith.constant 0 : index
    %11 = vector.load %arg7[%c0_11, %c0_12] : memref<16x32xf32, #tpu.memory_space<vmem>>, vector<16x32xf32>
    %12 = arith.subf %10, %11 : vector<16x32xf32>
    %13 = arith.addf %9, %12 : vector<16x32xf32>
    %cst_13 = arith.constant 0.000000e+00 : f32
    %14 = vector.broadcast %cst_13 : f32 to vector<16x32xf32>
    %15 = arith.cmpf oge, %13, %14 : vector<16x32xf32>
    %cst_14 = arith.constant 0.000000e+00 : f32
    %16 = vector.broadcast %cst_14 : f32 to vector<16x32xf32>
    %17 = arith.select %15, %0, %16 : vector<16x32xi1>, vector<16x32xf32>
    %c0_15 = arith.constant 0 : index
    %c0_16 = arith.constant 0 : index
    %18 = vector.load %arg8[%c0_15, %c0_16] : memref<16x32xf32, #tpu.memory_space<vmem>>, vector<16x32xf32>
    tpu.vector_store %arg8[%c0_15, %c0_16], %17 {strides = array<i32>} : memref<16x32xf32, #tpu.memory_space<vmem>>, vector<16x32xf32>,
    return
  }
  func.func @transform_0(%arg0: i32) -> (i32, i32) {
    %c0_i32 = arith.constant 0 : i32
    %c0_i32_0 = arith.constant 0 : i32
    return %arg0, %c0_i32 : i32, i32
  }
  func.func @transform_1(%arg0: i32) -> (i32, i32) {
    %c0_i32 = arith.constant 0 : i32
    %c0_i32_0 = arith.constant 0 : i32
    %c0_i32_1 = arith.constant 0 : i32
    return %c0_i32, %c0_i32_0 : i32, i32
  }
  func.func @transform_2(%arg0: i32) -> (i32, i32) {
    %c0_i32 = arith.constant 0 : i32
    %c0_i32_0 = arith.constant 0 : i32
    %c0_i32_1 = arith.constant 0 : i32
    return %c0_i32, %c0_i32_0 : i32, i32
  }
  func.func @transform_3(%arg0: i32) -> (i32, i32) {
    %c0_i32 = arith.constant 0 : i32
    %c0_i32_0 = arith.constant 0 : i32
    %c0_i32_1 = arith.constant 0 : i32
    return %c0_i32, %c0_i32_0 : i32, i32
  }
  func.func @transform_4(%arg0: i32) -> (i32, i32) {
    %c0_i32 = arith.constant 0 : i32
    %c0_i32_0 = arith.constant 0 : i32
    %c0_i32_1 = arith.constant 0 : i32
    return %c0_i32, %c0_i32_0 : i32, i32
  }
  func.func @transform_5(%arg0: i32) -> (i32, i32) {
    %c0_i32 = arith.constant 0 : i32
    %c0_i32_0 = arith.constant 0 : i32
    return %arg0, %c0_i32 : i32, i32
  }
  func.func @transform_6(%arg0: i32) -> (i32, i32) {
    %c0_i32 = arith.constant 0 : i32
    %c0_i32_0 = arith.constant 0 : i32
    return %arg0, %c0_i32 : i32, i32
  }
  func.func @transform_7(%arg0: i32) -> (i32, i32) {
    %c0_i32 = arith.constant 0 : i32
    %c0_i32_0 = arith.constant 0 : i32
    return %arg0, %c0_i32 : i32, i32
  }
}

</mosaic_0001>

<bundles_post_ra>
// kernel: tpu_custom_call.1
= control target key start
LH: loop header
LB: loop body
LE: loop exit
PB: predicated region body
PF: predicated region fallthrough
CT: control target
= control target key end

     0   :  { %12 = vsyncpa [#allocation3], 0  ;;  %s482_s0 = inlined_call_operand.hbm [shape: f32[16,32], index: 0, kind: input, shape index: {}]   ;;  %s483_s1 = inlined_call_operand.hbm [shape: f32[32,32], index: 1, kind: input, shape index: {}]   ;;  %s484_s2 = inlined_call_operand.hbm [shape: f32[32,32], index: 2, kind: input, shape index: {}]   ;;  %s485_s3 = inlined_call_operand.vmem [shape: f32[1,32], index: 3, kind: input, shape index: {}]   ;;  %s486_s4 = inlined_call_operand.vmem [shape: f32[1,32], index: 4, kind: input, shape index: {}]   ;;  %s487_s5 = inlined_call_operand.hbm [shape: f32[16,32], index: 5, kind: input, shape index: {}]   ;;  %s488_s6 = inlined_call_operand.hbm [shape: f32[16,32], index: 6, kind: input, shape index: {}]   ;;  %s489_s7 = inlined_call_operand.hbm [shape: f32[16,32], index: 7, kind: output, shape index: {}]  }
   0x1   :  { %13 = vsyncpa [#allocation6], 0 }
   0x2   :  { %14 = vsyncpa [#allocation9], 0 }
   0x3   :  { %15 = vsyncpa [#allocation4], 0  ;;  %s388_s24 = smov [#allocation5]   ;;  %s389_s26 = smov [#allocation8]  }
   0x4   :  { %s33_s25 = sshll.u32 %s388_s24, 4  ;;  %s61_s27 = sshll.u32 %s389_s26, 4  ;;  %s34_s25 = int_to_ptr.vmem [resolvable:$true] %s33_s25  ;;  %s62_s27 = int_to_ptr.vmem [resolvable:$true] %s61_s27 }
   0x5   :  { %s268_s28 = scalar_lea.vmem %s34_s25, 512  ;;  %p273_p1 = scmp.lt.s32.totalorder %s34_s25, %s34_s25 }
   0x6   :  { %p269_p0 = scmp.ne.s32.totalorder %s34_s25, %s268_s28  ;;  %p274_p2 = scmp.lt.s32.totalorder %s268_s28, %s268_s28 }
   0x8   :  { %p275_p3 = por %p274_p2, %p273_p1 }
   0xa   :  { %p276_p4 = pnand %p275_p3, %p269_p0 }
   0xc   :  { %279 = shalt.err (!%p276_p4)
}
   0xd   :  { %s390_s29 = smov 128   ;;  %s391_s30 = smov 8  }
   0xe   :  { %39 = dma.hbm_to_vmem [thread:$0]  %s483_s1, 512, %s34_s25, [#allocation6], %s390_s29, %s390_s29, %s391_s30  }
   0xf   :  { %s288_s10 = scalar_lea.vmem %s62_s27, 256  ;;  %p293_p6 = scmp.lt.s32.totalorder %s62_s27, %s62_s27 }
  0x10   :  { %p289_p5 = scmp.ne.s32.totalorder %s62_s27, %s288_s10  ;;  %p294_p7 = scmp.lt.s32.totalorder %s288_s10, %s288_s10 }
  0x12   :  { %p295_p8 = por %p294_p7, %p293_p6 }
  0x14   :  { %p296_p9 = pnand %p295_p8, %p289_p5 }
  0x16   :  { %299 = shalt.err (!%p296_p9)
}
  0x17   :  { %67 = dma.hbm_to_vmem [thread:$0]  %s487_s5, 256, %s62_s27, [#allocation9], %s390_s29, %s390_s29, %s391_s30  }
  0x18   :  { %s392_s13 = smov [#allocation2]   ;;  %s393_s15 = smov [#allocation7]  }
  0x19   :  { %s21_s14 = sshll.u32 %s392_s13, 4  ;;  %s45_s16 = sshll.u32 %s393_s15, 4  ;;  %s22_s14 = int_to_ptr.vmem [resolvable:$true] %s21_s14  ;;  %s46_s16 = int_to_ptr.vmem [resolvable:$true] %s45_s16 }
  0x1a   :  { %s308_s1 = scalar_lea.vmem %s22_s14, 256  ;;  %p313_p11 = scmp.lt.s32.totalorder %s22_s14, %s22_s14 }
  0x1b   :  { %p309_p10 = scmp.ne.s32.totalorder %s22_s14, %s308_s1  ;;  %p314_p12 = scmp.lt.s32.totalorder %s308_s1, %s308_s1 }
  0x1d   :  { %p315_p13 = por %p314_p12, %p313_p11 }
  0x1f   :  { %p316_p0 = pnand %p315_p13, %p309_p10 }
  0x21   :  { %319 = shalt.err (!%p316_p0)
}
  0x22   :  { %27 = dma.hbm_to_vmem [thread:$0]  %s482_s0, 256, %s22_s14, [#allocation3], %s390_s29, %s390_s29, %s391_s30  }
  0x23   :  { %s328_s5 = scalar_lea.vmem %s46_s16, 512  ;;  %p333_p2 = scmp.lt.s32.totalorder %s46_s16, %s46_s16 }
  0x24   :  { %p329_p1 = scmp.ne.s32.totalorder %s46_s16, %s328_s5  ;;  %p334_p3 = scmp.lt.s32.totalorder %s328_s5, %s328_s5 }
  0x26   :  { %p335_p4 = por %p334_p3, %p333_p2 }
  0x28   :  { %p336_p5 = pnand %p335_p4, %p329_p1 }
  0x2a   :  { %339 = shalt.err (!%p336_p5)
}
  0x2b   :  { %51 = dma.hbm_to_vmem [thread:$0]  %s484_s2, 512, %s46_s16, [#allocation6], %s390_s29, %s390_s29, %s391_s30  }
  0x2c   :  { %s394_s21 = smov [#allocation10]  }
  0x2d   :  { %s73_s22 = sshll.u32 %s394_s21, 4  ;;  %s74_s22 = int_to_ptr.vmem [resolvable:$true] %s73_s22 }
  0x2e   :  { %s348_s23 = scalar_lea.vmem %s74_s22, 256  ;;  %p353_p7 = scmp.lt.s32.totalorder %s74_s22, %s74_s22 }
  0x2f   :  { %p349_p6 = scmp.ne.s32.totalorder %s74_s22, %s348_s23  ;;  %p354_p8 = scmp.lt.s32.totalorder %s348_s23, %s348_s23 }
  0x31   :  { %p355_p9 = por %p354_p8, %p353_p7 }
  0x33   :  { %p356_p10 = pnand %p355_p9, %p349_p6 }
  0x35   :  { %359 = shalt.err (!%p356_p10)
}
  0x36   :  { %79 = dma.hbm_to_vmem [thread:$0]  %s488_s6, 256, %s74_s22, [#allocation9], %s390_s29, %s390_s29, %s391_s30  }
  0x37   :  { %380 = dma.done.wait [#allocation3], 256  }
  0x38   :  { %381 = vsyncadd [#allocation3], 4294967040 }
  0x39   :  { %382 = dma.done.wait [#allocation6], 1024  }
  0x3a   :  { %383 = vsyncadd [#allocation6], 4294966272 }
  0x3b   :  { %384 = dma.done.wait [#allocation9], 512  }
  0x3c   :  { %385 = vsyncadd [#allocation9], 4294966784  ;;  %v100_v0 = vld [vmem:[#allocation5 + $0x18] sm:$0xff]  ;;  %v99_v2 = vld [vmem:[#allocation5 + $0x10] sm:$0xff]  ;;  %vm118_vm0 = vcmask 261120   ;;  %v113_v14 = vlaneseq  ;;  %s395_s27 = smov [#allocation11]  }
  0x3d   :  { %v104_v1 = vld [vmem:[#allocation7 + $0x18] sm:$0xff]  ;;  %v103_v4 = vld [vmem:[#allocation7 + $0x10] sm:$0xff]  ;;  %v98_v5 = vld [vmem:[#allocation5 + $0x8] sm:$0xff] }
  0x3e   :  { %v108_v3 = vsub.f32 %v100_v0, %v104_v1  ;;  %v102_v6 = vld [vmem:[#allocation7 + $0x8] sm:$0xff]  ;;  %v107_v7 = vsub.f32 %v99_v2, %v103_v4  ;;  %v97_v8 = vld [vmem:[#allocation5] sm:$0xff]  ;;  %v95_v10 = vld [vmem:[#allocation2] sm:$0xff]  ;;  %v114_v15 = vshrl.u32 %v113_v14, 7 }
  0x3f   :  { %v101_v9 = vld [vmem:[#allocation7] sm:$0xff]  ;;  %v106_v11 = vsub.f32 %v98_v5, %v102_v6  ;;  %249 = vmatprep.mubr.msk.f32.mxu0 %vm118_vm0, %v95_v10  ;;  %v96_v13 = vld [vmem:[#allocation2 + $0x8] sm:$0xff]  ;;  %v109_v16 = vld [vmem:[%s485_s3] sm:$0x1]  ;;  %s219_s3 = sshll.u32 %s395_s27, 4  ;;  %s220_s3 = int_to_ptr.vmem [resolvable:$true] %s219_s3 }
  0x40   :  { %241 = vmatprep.subr.mxu0 %v108_v3  ;;  %v105_v12 = vsub.f32 %v97_v8, %v101_v9  ;;  %v110_v17 = vld [vmem:[%s486_s4] sm:$0x1]  ;;  %v115_v19 = vsub.s32 0, %v114_v15  ;;  %v201_v20 = vld [vmem:[#allocation8 + $0x8] sm:$0xff]  ;;  %v203_v21 = vld [vmem:[#allocation10 + $0x8] sm:$0xff]  ;;  %s360_s4 = scalar_lea.vmem %s220_s3, 256  ;;  %p365_p12 = scmp.lt.s32.totalorder %s220_s3, %s220_s3 }
  0x41   :  { %242 = vmatpush3.msra.mxu0 %v108_v3  ;;  %v111_v18 = vsub.f32 %v109_v16, %v110_v17  ;;  %v200_v23 = vld [vmem:[#allocation8] sm:$0xff]  ;;  %v202_v24 = vld [vmem:[#allocation10] sm:$0xff]  ;;  %v205_v25 = vsub.f32 %v201_v20, %v203_v21  ;;  %p361_p11 = scmp.ne.s32.totalorder %s220_s3, %s360_s4  ;;  %p366_p13 = scmp.lt.s32.totalorder %s360_s4, %s360_s4 }
  0x42   :  { %243 = vmatprep.subr.mxu0 %v107_v7  ;;  %v204_v28 = vsub.f32 %v200_v23, %v202_v24 }
  0x43   :  { %244 = vmatpush3.msra.mxu0 %v107_v7  ;;  %v116_v22 = vrot.slane %v111_v18, %v115_v19  ;;  %p367_p0 = por %p366_p13, %p365_p12 }
  0x44   :  { %245 = vmatprep.subr.mxu0 %v106_v11 }
  0x45   :  { %246 = vmatpush3.msra.mxu0 %v106_v11  ;;  %p368_p1 = pnand %p367_p0, %p361_p11 }
  0x46   :  { %247 = vmatprep.subr.mxu0 %v105_v12 }
  0x47   :  { %248 = vmatpush3.msra.mxu0 %v105_v12 }
  0x48   :  { %250 = vmatmul.mubr.msk.f32.vlgmr.msra.gmra.mxu0 %vm118_vm0, %v96_v13 }
 0x108   :  { %v251_v26 = vpop.f32.mrf.mxu0 }
 0x109   :  { %v197_v27 = vadd.f32 %v251_v26, %v116_v22 }
 0x10a   :  { %v191_v29 = vpop.f32.mrf.mxu0 }
 0x10b   :  { %v207_v30 = vadd.f32 %v205_v25, %v197_v27  ;;  %v192_v31 = vadd.f32 %v191_v29, %v116_v22 }
 0x10d   :  { %vm209_vm1 = vcmp.ge.f32.partialorder %v207_v30, 0.0  ;;  %v206_v32 = vadd.f32 %v204_v28, %v192_v31 }
 0x10e   :  { %v211_v33 = vsel %vm209_vm1, %v96_v13, 0.0 }
 0x10f   :  { %213 = vst.msk [vmem:[#allocation11 + $0x8] sm:$0xff] %vm118_vm0, %v211_v33  ;;  %vm208_vm2 = vcmp.ge.f32.partialorder %v206_v32, 0.0 }
 0x110   :  { %v210_v34 = vsel %vm208_vm2, %v95_v10, 0.0 }
 0x111   :  { %212 = vst.msk [vmem:[#allocation11] sm:$0xff] %vm118_vm0, %v210_v34 }
 0x112   :  { %371 = shalt.err (!%p368_p1)
}
 0x113   :  { %225 = dma.vmem_to_hbm [thread:$0]  %s220_s3, 256, %s489_s7, [#allocation4], %s390_s29, %s390_s29, %s391_s30  }
 0x114   :  { %386 = dma.done.wait [#allocation4], 256  }
 0x115   :  { %387 = vsyncadd [#allocation4], 4294967040 }
 0x116   :  { %229 = vsyncpa [#allocation3], 1 }
 0x117   :  { %230 = vsyncpa [#allocation6], 1 }
 0x118   :  { %231 = vsyncpa [#allocation9], 1 }
 0x119   :  { %232 = vsyncpa [#allocation4], 1 }

</bundles_post_ra>
